<compile_context>
chip_gen: v7x
topology: tpu7x:2x2x1
jax: 0.10.0
libtpu: 0.0.40
codegen_flags: <defaults>
</compile_context>

<pallas_src>
import jax
import jax.numpy as jnp
from jax import lax
from jax.experimental import pallas as pl
from jax.experimental.pallas import tpu as pltpu


def _vmem_budget_bytes() -> int:
    """Conservative per-step VMEM budget for the pipelined buffers."""
    try:
        cap = pltpu.get_tpu_info().vmem_capacity_bytes
    except Exception:
        cap = 64 * 1024 * 1024  # assume the smallest (v7x) if the query fails
    # Stay well inside the default scoped-VMEM limit (~cap/4, <= 32 MiB).
    return max(4 << 20, min(cap // 4, 32 << 20))


def _pick_batch_block(B: int, T: int, bytes_per_batch: int, budget: int) -> int:
    """Pick Bt (batch windows per grid step).

    Constraints / preferences:
      * Bt divides B.
      * Lane tile Bt*T is a multiple of 128, or Bt == B (block == full array).
      * Double-buffered in+out blocks fit the VMEM budget.
      * Prefer >= 2 grid steps (megacore sharding on v7x) when possible.
    """
    cands = [bt for bt in range(1, B + 1)
             if B % bt == 0 and ((bt * T) % 128 == 0 or bt == B)]
    fitting = [bt for bt in cands if 2 * bt * bytes_per_batch <= budget]
    # If nothing fits, fall back to the smallest legal block (a time-tiled grid
    # axis is the real fix for that regime -- see TODO above).
    pool = fitting or [min(cands)]
    multi = [bt for bt in pool if B // bt >= 2]
    return max(multi or pool)


def _make_kernel(C_in: int, K: int, NL: int, dilation: int):
    shifts = [(K - 1 - k) * dilation for k in range(K)]

    def kernel(x_ref, w_ref, b_ref, keep_ref, o_ref):
        xb = x_ref[...]            # (C_in, NL)  compute dtype
        keep = keep_ref[...]       # (K, NL)     compute dtype, 0/1

        # Build all K taps once per grid step (hoisted; no per-batch loop).
        taps = []
        for k, s in enumerate(shifts):
            if s == 0:
                taps.append(xb)
            elif s >= NL:
                taps.append(jnp.zeros_like(xb))
            else:
                # Static lane shift right by s with zero fill on the left,
                # then zero the first s columns of every batch window so a
                # window never reads the tail of the previous one.
                shifted = jnp.concatenate(
                    [jnp.zeros((C_in, s), xb.dtype), xb[:, : NL - s]], axis=1)
                taps.append(shifted * keep[k:k + 1, :])

        # im2col RHS: K taps stacked on the sublane axis -> one fused matmul
        # with lane width NL = Bt*T.
        rhs = taps[0] if K == 1 else jnp.concatenate(taps, axis=0)
        acc = jnp.dot(w_ref[...], rhs, preferred_element_type=jnp.float32)
        # Single bias broadcast + single lane-dense store per grid step.
        o_ref[...] = (acc + b_ref[...]).astype(o_ref.dtype)

    return kernel


def causal_conv1d(x, weight, bias, *, stride: int = 1, dilation: int = 1,
                  compute_dtype=None, batch_block=None):
    """Causal 1D conv matching Conv1dCausal.forward.

    Args:
      x:      (B, C_in, T)       float32 (channels-first, PyTorch NCW)
      weight: (C_out, C_in, K)   float32 (PyTorch nn.Conv1d layout)
      bias:   (C_out,)           float32
      compute_dtype: dtype fed to the MXU (e.g. jnp.bfloat16 on v6e/v7x);
                     accumulation is always f32.
    Returns:
      y: (B, C_out, T_out) in x.dtype, T_out = floor((T - 1)/stride) + 1
    """
    B, C_in, T = x.shape
    C_out, C_in_w, K = weight.shape
    assert C_in == C_in_w
    T_out = (T - 1) // stride + 1
    cdt = x.dtype if compute_dtype is None else jnp.dtype(compute_dtype)

    # VMEM-aware batch-block selection (out blocks are f32).
    bytes_per_batch = C_in * T * jnp.dtype(cdt).itemsize + C_out * T * 4
    if batch_block is None:
        Bt = _pick_batch_block(B, T, bytes_per_batch, _vmem_budget_bytes())
    else:
        Bt = batch_block
    assert B % Bt == 0
    assert (Bt * T) % 128 == 0 or Bt == B, "lane tile must be 128-multiple or full"
    NL = Bt * T

    # Wrapper-side layout plumbing (tiny XLA ops, sanctioned by the review):
    #   x    -> (C_in, B*T)  : batch folded onto the lane/time axis
    #   w    -> im2col (C_out, K*C_in):  w2[o, k*C_in + i] = weight[o, i, k]
    #   bias -> (C_out, 1) f32 (added post-matmul in f32)
    #   keep -> (K, Bt*T) 0/1 mask; row k zeroes the first (K-1-k)*dilation
    #           columns of every T-wide batch window (the causal left pad).
    x2 = jnp.transpose(x, (1, 0, 2)).reshape(C_in, B * T).astype(cdt)
    w2 = jnp.transpose(weight, (0, 2, 1)).reshape(C_out, K * C_in).astype(cdt)
    b2 = bias.reshape(C_out, 1).astype(jnp.float32)
    pos = jnp.arange(NL, dtype=jnp.int32) % T
    shifts = jnp.asarray([(K - 1 - k) * dilation for k in range(K)], jnp.int32)
    keep = (pos[None, :] >= shifts[:, None]).astype(cdt)

    kernel = _make_kernel(C_in, K, NL, dilation)

    y2 = pl.pallas_call(
        kernel,
        out_shape=jax.ShapeDtypeStruct((C_out, B * T), jnp.float32),
        grid_spec=pltpu.PrefetchScalarGridSpec(
            num_scalar_prefetch=0,
            grid=(B // Bt,),
            in_specs=[
                pl.BlockSpec((C_in, NL), lambda i: (0, i)),
                pl.BlockSpec((C_out, K * C_in), lambda i: (0, 0)),
                pl.BlockSpec((C_out, 1), lambda i: (0, 0)),
                pl.BlockSpec((K, NL), lambda i: (0, 0)),
            ],
            out_specs=pl.BlockSpec((C_out, NL), lambda i: (0, i)),
        ),
        compiler_params=pltpu.CompilerParams(
            dimension_semantics=("parallel",)),
    )(x2, w2, b2, keep)

    # Back to (B, C_out, T); decimate for stride > 1 (dense compute + wrapper
    # decimation keeps every in-kernel load/store lane-aligned).
    y = jnp.transpose(y2.reshape(C_out, B, T), (1, 0, 2))
    if stride > 1:
        y = y[:, :, ::stride]
    assert y.shape == (B, C_out, T_out)
    return y.astype(x.dtype)


def _reference(x, weight, bias, *, stride, dilation):
    """Pure-JAX reference (mirrors F.pad + nn.Conv1d)."""
    padding = (weight.shape[-1] - 1) * dilation
    x_pad = jnp.pad(x, ((0, 0), (0, 0), (padding, 0)))
    y = lax.conv_general_dilated(
        x_pad, weight,
        window_strides=(stride,),
        padding="VALID",
        rhs_dilation=(dilation,),
        dimension_numbers=("NCH", "OIH", "NCH"),
    )
    return y + bias.reshape(1, -1, 1)


if __name__ == "__main__":
    # Small shapes consistent with the module: batch=2, in_channels=4,
    # out_channels=8, seq length T=16, kernel_size=3.
    B, C_in, C_out, T, K = 2, 4, 8, 16, 3

    key = jax.random.PRNGKey(0)
    kx, kw, kb = jax.random.split(key, 3)
    x = jax.random.normal(kx, (B, C_in, T), dtype=jnp.float32)
    weight = jax.random.normal(kw, (C_out, C_in, K), dtype=jnp.float32) * 0.1
    bias = jax.random.normal(kb, (C_out,), dtype=jnp.float32) * 0.1

    # f32 path; also exercises the previously-untested stride>1 configurations.
    for stride, dilation in [(1, 2), (2, 1), (2, 2)]:
        y = jax.block_until_ready(
            causal_conv1d(x, weight, bias, stride=stride, dilation=dilation))
        y_ref = _reference(x, weight, bias, stride=stride, dilation=dilation)
        assert y.shape == y_ref.shape, (y.shape, y_ref.shape)
        assert jnp.allclose(y, y_ref, atol=1e-4, rtol=1e-4), (
            f"f32 mismatch vs reference (stride={stride}, dilation={dilation})")

    # bf16 compute path (v6e/v7x recommendation): looser tolerance.
    y_bf16 = jax.block_until_ready(
        causal_conv1d(x, weight, bias, stride=1, dilation=2,
                      compute_dtype=jnp.bfloat16))
    y_ref = _reference(x, weight, bias, stride=1, dilation=2)
    assert jnp.allclose(y_bf16, y_ref, atol=3e-2, rtol=3e-2), "bf16 mismatch"

    print("KERNEL_OK")
</pallas_src>

<mosaic_0001>
module attributes {stable_mosaic.version = 11 : i64} {
  func.func @kernel(%arg0: i32, %arg1: memref<4x32xf32, #tpu.memory_space<vmem>>, %arg2: memref<8x12xf32, #tpu.memory_space<vmem>>, %arg3: memref<8x1xf32, #tpu.memory_space<vmem>>, %arg4: memref<3x32xf32, #tpu.memory_space<vmem>>, %arg5: memref<8x32xf32, #tpu.memory_space<vmem>>) attributes {dimension_semantics = [#tpu.dimension_semantics<parallel>], iteration_bounds = array<i64: 1>, scalar_prefetch = 0 : i64, scratch_operands = 0 : i64, tpu.core_type = #tpu.core_type<tc>, window_params = [{transform_indices = @transform_0, window_bounds = array<i64: 4, 32>}, {pipeline_mode = #tpu.pipeline_mode<synchronous>, transform_indices = @transform_1, window_bounds = array<i64: 8, 12>}, {pipeline_mode = #tpu.pipeline_mode<synchronous>, transform_indices = @transform_2, window_bounds = array<i64: 8, 1>}, {pipeline_mode = #tpu.pipeline_mode<synchronous>, transform_indices = @transform_3, window_bounds = array<i64: 3, 32>}, {transform_indices = @transform_4, window_bounds = array<i64: 8, 32>}]} {
    %c0 = arith.constant 0 : index
    %c0_0 = arith.constant 0 : index
    %0 = vector.load %arg1[%c0, %c0_0] : memref<4x32xf32, #tpu.memory_space<vmem>>, vector<4x32xf32>
    %c0_1 = arith.constant 0 : index
    %c0_2 = arith.constant 0 : index
    %1 = vector.load %arg4[%c0_1, %c0_2] : memref<3x32xf32, #tpu.memory_space<vmem>>, vector<3x32xf32>
    %cst = arith.constant 0.000000e+00 : f32
    %2 = vector.broadcast %cst : f32 to vector<4x4xf32>
    %3 = vector.extract_strided_slice %0 {offsets = [0, 0], sizes = [4, 28], strides = [1, 1]} : vector<4x32xf32> to vector<4x28xf32>
    %4 = tpu.concatenate %2, %3 in 1 : vector<4x4xf32>, vector<4x28xf32> -> vector<4x32xf32>
    %5 = vector.extract_strided_slice %1 {offsets = [0, 0], sizes = [1, 32], strides = [1, 1]} : vector<3x32xf32> to vector<1x32xf32>
    %6 = vector.broadcast %5 : vector<1x32xf32> to vector<4x32xf32>
    %7 = arith.mulf %4, %6 : vector<4x32xf32>
    %cst_3 = arith.constant 0.000000e+00 : f32
    %8 = vector.broadcast %cst_3 : f32 to vector<4x2xf32>
    %9 = vector.extract_strided_slice %0 {offsets = [0, 0], sizes = [4, 30], strides = [1, 1]} : vector<4x32xf32> to vector<4x30xf32>
    %10 = tpu.concatenate %8, %9 in 1 : vector<4x2xf32>, vector<4x30xf32> -> vector<4x32xf32>
    %11 = vector.extract_strided_slice %1 {offsets = [1, 0], sizes = [1, 32], strides = [1, 1]} : vector<3x32xf32> to vector<1x32xf32>
    %12 = vector.broadcast %11 : vector<1x32xf32> to vector<4x32xf32>
    %13 = arith.mulf %10, %12 : vector<4x32xf32>
    %14 = tpu.concatenate %7, %13, %0 in 0 : vector<4x32xf32>, vector<4x32xf32>, vector<4x32xf32> -> vector<12x32xf32>
    %c0_4 = arith.constant 0 : index
    %c0_5 = arith.constant 0 : index
    %15 = vector.load %arg2[%c0_4, %c0_5] : memref<8x12xf32, #tpu.memory_space<vmem>>, vector<8x12xf32>
    %cst_6 = arith.constant dense<0.000000e+00> : vector<8x32xf32>
    %16 = tpu.matmul %15, %14, %cst_6 {dimension_numbers = #tpu.dot_dimension_numbers<[1], [0], [0], [1], [0, 0, 1, 1], [], []>} : vector<8x12xf32>, vector<12x32xf32>, vector<8x32xf32> -> vector<8x32xf32>
    %c0_7 = arith.constant 0 : index
    %c0_8 = arith.constant 0 : index
    %17 = vector.load %arg3[%c0_7, %c0_8] : memref<8x1xf32, #tpu.memory_space<vmem>>, vector<8x1xf32>
    %18 = vector.broadcast %17 : vector<8x1xf32> to vector<8x32xf32>
    %19 = arith.addf %16, %18 : vector<8x32xf32>
    %c0_9 = arith.constant 0 : index
    %c0_10 = arith.constant 0 : index
    %20 = vector.load %arg5[%c0_9, %c0_10] : memref<8x32xf32, #tpu.memory_space<vmem>>, vector<8x32xf32>
    tpu.vector_store %arg5[%c0_9, %c0_10], %19 {strides = array<i32>} : memref<8x32xf32, #tpu.memory_space<vmem>>, vector<8x32xf32>,
    return
  }
  func.func @transform_0(%arg0: i32) -> (i32, i32) {
    %c0_i32 = arith.constant 0 : i32
    %c0_i32_0 = arith.constant 0 : i32
    return %c0_i32, %arg0 : i32, i32
  }
  func.func @transform_1(%arg0: i32) -> (i32, i32) {
    %c0_i32 = arith.constant 0 : i32
    %c0_i32_0 = arith.constant 0 : i32
    %c0_i32_1 = arith.constant 0 : i32
    return %c0_i32, %c0_i32_0 : i32, i32
  }
  func.func @transform_2(%arg0: i32) -> (i32, i32) {
    %c0_i32 = arith.constant 0 : i32
    %c0_i32_0 = arith.constant 0 : i32
    %c0_i32_1 = arith.constant 0 : i32
    return %c0_i32, %c0_i32_0 : i32, i32
  }
  func.func @transform_3(%arg0: i32) -> (i32, i32) {
    %c0_i32 = arith.constant 0 : i32
    %c0_i32_0 = arith.constant 0 : i32
    %c0_i32_1 = arith.constant 0 : i32
    return %c0_i32, %c0_i32_0 : i32, i32
  }
  func.func @transform_4(%arg0: i32) -> (i32, i32) {
    %c0_i32 = arith.constant 0 : i32
    %c0_i32_0 = arith.constant 0 : i32
    return %c0_i32, %arg0 : i32, i32
  }
}

</mosaic_0001>

<bundles_post_ra>
// kernel: tpu_custom_call.1
= control target key start
LH: loop header
LB: loop body
LE: loop exit
PB: predicated region body
PF: predicated region fallthrough
CT: control target
= control target key end

     0   :  { %s195_s17 = smov 2   ;;  %v196_v1 = vmov 0.0|0.0   ;;  %s252_s0 = inlined_call_operand.vmem [shape: f32[4,32], index: 0, kind: input, shape index: {}]   ;;  %s253_s1 = inlined_call_operand.vmem [shape: f32[8,12], index: 1, kind: input, shape index: {}]   ;;  %s254_s2 = inlined_call_operand.vmem [shape: f32[8,1], index: 2, kind: input, shape index: {}]   ;;  %s255_s3 = inlined_call_operand.vmem [shape: f32[3,32], index: 3, kind: input, shape index: {}]   ;;  %s256_s4 = inlined_call_operand.hbm [shape: f32[8,32], index: 4, kind: output, shape index: {}]  }
   0x1   :  { %v18_v0 = vld [vmem:[%s252_s0] sm:$0xf]  ;;  %157 = vmatprep.subr.bf16.mxu0 %v196_v1 }
   0x2   :  { %31 = vrot.lane.b32.xlu0 %v18_v0, %s195_s17  ;;  %v47_v2 = vld [vmem:[%s254_s2] sm:$0xff] }
   0x3   :  { %9 = vsyncpa [#allocation3], 0  ;;  %vm197_vm0 = vmmov 0   ;;  %v198_v3 = vmov 0.0   ;;  %v199_v4 = vmov 0   ;;  %s200_s20 = smov 4   ;;  %v26_v5 = vlaneseq }
   0x4   :  { %154 = vmatprep.mubr.msk.f32.mxu0 %vm197_vm0, %v198_v3  ;;  %169 = vset.pattern.permute.xlu1 %v199_v4  ;;  %v19_v8 = vld [vmem:[%s255_s3] sm:$0x7]  ;;  %vm34_vm1 = vcmask 15360   ;;  %vm24_vm2 = vcmask 31744   ;;  %vm44_vm3 = vcmask 1043456   ;;  %vm201_vm4 = vmmov 1  }
   0x5   :  { %170 = vset.pattern.permute.xlu0 %v199_v4  ;;  %50 = vperm.xlu1 %169, %v47_v2   ;;  %v27_v6 = vshrl.u32 %v26_v5, 7  ;;  %vm159_vm5 = vmpackc.low %vm44_vm3, %vm201_vm4  ;;  %v46_v21 = vld [vmem:[%s253_s1] sm:$0xff]  ;;  %vm53_vm6 = vcmask 97280   ;;  %s202_s22 = smov [#allocation2]   ;;  %vm129_vm7 = vcmask 261120  }
   0x6   :  { %21 = vrot.lane.b32.xlu0 %v18_v0, %s200_s20  ;;  %s137_s23 = sshll.u32 %s202_s22, 4  ;;  %s138_s23 = int_to_ptr.vmem [resolvable:$true] %s137_s23 }
   0x7   :  { %v38_v7 = vsub.s32 1, %v27_v6  ;;  %v28_v10 = vsub.s32 0, %v27_v6  ;;  %s171_s24 = scalar_lea.vmem %s138_s23, 128  ;;  %p176_p1 = scmp.lt.s32.totalorder %s138_s23, %s138_s23 }
   0x8   :  { %p172_p0 = scmp.ne.s32.totalorder %s138_s23, %s171_s24  ;;  %p177_p2 = scmp.lt.s32.totalorder %s171_s24, %s171_s24 }
   0x9   :  { %v39_v9 = vrot.slane %v19_v8, %v38_v7  ;;  %v29_v14 = vrot.slane %v19_v8, %v28_v10 }
   0xa   :  { %p178_p3 = por %p177_p2, %p176_p1 }
   0xc   :  { %p179_p4 = pnand %p178_p3, %p172_p0 }
  0x74   :  { %v32_v11 = vpop.permute.xlu0 %31 }
  0x75   :  { %v35_v12 = vsel %vm34_vm1, 0.0, %v32_v11 }
  0x76   :  { %v40_v13 = vmul.f32 %v39_v9, %v35_v12 }
  0x78   :  { %v22_v15 = vpop.permute.xlu0 %21  ;;  %v42_v17 = vrot.slane %v40_v13, 4 }
  0x79   :  { %v25_v16 = vsel %vm24_vm2, 0.0, %v22_v15 }
  0x7a   :  { %v30_v18 = vmul.f32 %v29_v14, %v25_v16 }
  0x7c   :  { %v45_v19 = vsel %vm44_vm3, %v30_v18, %v42_v17 }
  0x7d   :  { %v158_v20 = vpack.c.bf16 %v18_v0, %v45_v19 }
  0x7f   :  { %160 = vmatpush3.bf16.msk.msra.mxu0 %vm159_vm5, %v158_v20 }
  0x82   :  { %155 = vmatmul.mubr.msk.f32.vlgmr.msra.gmra.mrb[0].mxu0 %vm53_vm6, %v46_v21 }
  0x84   :  { %v51_v22 = vpop.permute.xlu1 %50 }
 0x155   :  { %v125_v23 = vpop.f32.mrb[0].mxu0 }
 0x156   :  { %v126_v24 = vadd.f32 %v125_v23, %v51_v22  ;;  %v156_v25 = vpop.f32.mrb[1].mxu0 }
 0x158   :  { %130 = vst.msk [vmem:[#allocation2] sm:$0xff] %vm129_vm7, %v126_v24 }
 0x159   :  { %182 = shalt.err (!%p179_p4)
}
 0x15a   :  { %s183_s26 = scalar_lea.hbm %s256_s4, 128 }
 0x15b   :  { %p184_p5 = scmp.ne.s32.totalorder %s256_s4, %s183_s26  ;;  %p187_p6 = scmp.lt.u32.totalorder %s183_s26, %s256_s4 }
 0x15d   :  { %p189_p7 = pnand %p187_p6, %p184_p5 }
 0x15f   :  { %192 = shalt.err (!%p189_p7)
}
 0x160   :  { %140 = dma.vmem_to_hbm [thread:$0]  %s138_s23, 128, %s256_s4, [#allocation3]  }
 0x161   :  { %193 = dma.done.wait [#allocation3], 128  }
 0x162   :  { %194 = vsyncadd [#allocation3], 4294967168 }
 0x163   :  { %144 = vsyncpa [#allocation3], 1 }

</bundles_post_ra>
